<compile_context>
chip_gen: v5e
topology: v5e:2x2
jax: 0.10.0
libtpu: 0.0.40
codegen_flags: <defaults>
</compile_context>

<pallas_src>
import jax
import jax.numpy as jnp
import numpy as np
from jax.experimental import pallas as pl
from jax.experimental.pallas import tpu as pltpu

# ----- small, module-consistent configuration ---------------------------------
WORDSIZE = 64          # vocabulary size
EMB = 16               # embaddingsize
HID = 32               # hiddensize
NUMLAYERS = 2
MAXLEN = 10            # encoder_outs_maxlength
BIDIR = True
L = NUMLAYERS * 2 if BIDIR else NUMLAYERS        # stacked GRU layers (4)
ENC_FEAT = 2 * HID if BIDIR else HID             # encoder output feature dim
H3 = 3 * HID
NEG = -1e30                                      # finite "minus infinity" for padded lanes

assert max(WORDSIZE, EMB, MAXLEN, ENC_FEAT, H3) <= 128, "slab width is 128 lanes"
assert L * HID == 128, "hidden-state carry assumes a full 128-lane row"


# ----- static row layout of the packed weight slab (all offsets 8-aligned) -----
def _align8(x):
    return ((x + 7) // 8) * 8


MAXLEN_PAD = _align8(MAXLEN)                 # encoder rows padded to 16 (aligned bmm)

R_EMB = 0                                    # embedding table (WORDSIZE, EMB)
R_WAH = _align8(R_EMB + WORDSIZE)            # attention W, h-part   (L*HID, MAXLEN)
R_WAE = _align8(R_WAH + L * HID)             # attention W, emb-part (EMB,   MAXLEN)
R_BA = _align8(R_WAE + EMB)                  # attention bias (1, 128), pad = NEG
R_WCE = _align8(R_BA + 1)                    # combine W, emb-part  (EMB, EMB)
R_WCA = _align8(R_WCE + EMB)                 # combine W, attn-part (ENC_FEAT, EMB)
R_BC = _align8(R_WCA + ENC_FEAT)             # combine bias (1, EMB)
R_WIH = []
_off = _align8(R_BC + 1)
for _l in range(L):                          # GRU input weights, per layer
    R_WIH.append(_off)
    _off = _align8(_off + (EMB if _l == 0 else HID))
R_BIH = _off                                 # GRU input biases (L, 3H)
_off = _align8(R_BIH + L)
R_WLO = _off                                 # output projection (HID, 128), pad cols = 0
R_BLO = _align8(R_WLO + HID)                 # output bias (1, 128), pad = NEG
W_ROWS = _align8(R_BLO + 1)                  # total slab rows (464)

WHH_ROWS = _align8(L * HID + 1)              # block-diag whh + 1 bias row (136)
R_BHH = L * HID


# ----- the Pallas kernel: one decoder step per grid iteration ------------------
def _attention_decoder_kernel(
    tok_ref,        # SMEM (T,) int32 : teacher-forced token sequence (scalar prefetch)
    hinit_ref,      # (1, 128)        : initial GRU hidden state, flattened
    enc_ref,        # (16, 2H)        : encoder outputs (rows >= MAXLEN are zero)
    w_ref,          # (W_ROWS, 128)   : packed weight slab (layout above), VMEM-resident
    whh_ref,        # (WHH_ROWS, L*3H): block-diag GRU hidden weights + bhh row
    out_ref,        # (1, 1, 128)     : this step's log-softmax row (padded to 128 lanes)
    hout_ref,       # (1, 128)        : final hidden state, flattened
    h_scr,          # VMEM (1, 128)   : hidden-state carry across grid steps
):
    f32 = jnp.float32
    t = pl.program_id(0)

    @pl.when(t == 0)
    def _init():
        h_scr[...] = hinit_ref[...]

    idx = tok_ref[t]
    hflat = h_scr[...]                                         # (1, L*H) = (1, 128)

    # --- embedding lookup: dynamic sublane read (R_EMB == 0); dropout == identity
    emb = w_ref[pl.ds(idx, 1), :][:, :EMB]                     # (1, E)

    # --- attention_weight = softmax(Linear(cat([h_flat, emb])))  (lane-dense 128;
    #     padded lanes carry bias NEG -> exp underflows to exactly 0)
    logits = (jnp.dot(hflat, w_ref[R_WAH:R_WAH + L * HID, :], preferred_element_type=f32)
              + jnp.dot(emb, w_ref[R_WAE:R_WAE + EMB, :], preferred_element_type=f32)
              + w_ref[R_BA:R_BA + 1, :])                       # (1, 128)
    m = jnp.max(logits, axis=1, keepdims=True)
    e = jnp.exp(logits - m)                                    # padded lanes exactly 0
    s = jnp.sum(e, axis=1, keepdims=True)

    # --- attention_app = softmax @ encoder_outs, normalization deferred past the bmm
    attn_un = jnp.dot(e[:, :MAXLEN_PAD], enc_ref[...],
                      preferred_element_type=f32)              # (1, 2H)
    attn_app = attn_un * pl.reciprocal(s, approx=False)

    # --- attention_com = relu(Linear(cat([emb, attn_app])))
    comb = (jnp.dot(emb, w_ref[R_WCE:R_WCE + EMB, :EMB], preferred_element_type=f32)
            + jnp.dot(attn_app, w_ref[R_WCA:R_WCA + ENC_FEAT, :EMB],
                      preferred_element_type=f32)
            + w_ref[R_BC:R_BC + 1, :EMB])
    x = jnp.maximum(comb, 0.0)                                 # (1, E)

    # --- stacked GRU, seq len 1 (PyTorch gate order r, z, n).
    #     Hidden-side gates for ALL layers in one block-diagonal matmul.
    gh_all = (jnp.dot(hflat, whh_ref[0:L * HID, :], preferred_element_type=f32)
              + whh_ref[R_BHH:R_BHH + 1, :])                   # (1, L*3H)

    hs = []
    for l in range(L):
        in_l = EMB if l == 0 else HID
        gi = (jnp.dot(x, w_ref[R_WIH[l]:R_WIH[l] + in_l, :H3], preferred_element_type=f32)
              + w_ref[R_BIH + l:R_BIH + l + 1, :H3])           # (1, 3H)
        gh = gh_all[:, l * H3:(l + 1) * H3]                    # (1, 3H)
        rz = jax.nn.sigmoid(gi[:, :2 * HID] + gh[:, :2 * HID])  # fused r/z sigmoid
        r = rz[:, :HID]
        z = rz[:, HID:]
        n = jnp.tanh(gi[:, 2 * HID:] + r * gh[:, 2 * HID:])
        h_prev = hflat[:, l * HID:(l + 1) * HID]
        h_new = (1.0 - z) * n + z * h_prev                     # (1, H)
        hs.append(h_new)
        x = h_new                                              # feed next layer

    h_vec = jnp.concatenate(hs, axis=1)                        # (1, 128), one lane-dense row
    h_scr[...] = h_vec
    hout_ref[...] = h_vec

    # --- out = log_softmax(Linear(h_top)); vocab padded to 128 lanes with NEG bias
    lo = (jnp.dot(x, w_ref[R_WLO:R_WLO + HID, :], preferred_element_type=f32)
          + w_ref[R_BLO:R_BLO + 1, :])                         # (1, 128)
    m2 = jnp.max(lo, axis=1, keepdims=True)
    lse = jnp.log(jnp.sum(jnp.exp(lo - m2), axis=1, keepdims=True)) + m2
    out_ref[...] = (lo - lse).reshape(1, 1, 128)


# ----- one-time weight packing (hoisted out of the hot path) -------------------
def prepare_params(params):
    f32 = jnp.float32
    W = jnp.zeros((W_ROWS, 128), f32)

    W = W.at[R_EMB:R_EMB + WORDSIZE, :EMB].set(params["embedding"])

    w_attn_T = params["w_attn"].T                               # (L*H+E, MAXLEN)
    W = W.at[R_WAH:R_WAH + L * HID, :MAXLEN].set(w_attn_T[:L * HID])
    W = W.at[R_WAE:R_WAE + EMB, :MAXLEN].set(w_attn_T[L * HID:])
    W = W.at[R_BA, :MAXLEN].set(params["b_attn"])
    W = W.at[R_BA, MAXLEN:].set(NEG)                            # kill padded softmax lanes

    w_comb_T = params["w_comb"].T                               # (E+2H, E)
    W = W.at[R_WCE:R_WCE + EMB, :EMB].set(w_comb_T[:EMB])
    W = W.at[R_WCA:R_WCA + ENC_FEAT, :EMB].set(w_comb_T[EMB:])
    W = W.at[R_BC, :EMB].set(params["b_comb"])

    for l in range(L):
        in_l = EMB if l == 0 else HID
        W = W.at[R_WIH[l]:R_WIH[l] + in_l, :H3].set(params["gru_w_ih"][l].T)
        W = W.at[R_BIH + l, :H3].set(params["gru_b_ih"][l])

    W = W.at[R_WLO:R_WLO + HID, :WORDSIZE].set(params["w_lo"].T)
    W = W.at[R_BLO, :WORDSIZE].set(params["b_lo"])
    W = W.at[R_BLO, WORDSIZE:].set(NEG)                         # kill padded log-softmax lanes

    WHH = jnp.zeros((WHH_ROWS, L * H3), f32)
    for l in range(L):
        WHH = WHH.at[l * HID:(l + 1) * HID, l * H3:(l + 1) * H3].set(params["gru_w_hh"][l].T)
        WHH = WHH.at[R_BHH, l * H3:(l + 1) * H3].set(params["gru_b_hh"][l])

    return {"W": W, "WHH": WHH}


# ----- hot-path wrapper: fused T-step decode -----------------------------------
@jax.jit
def attention_decoder_decode(prepped, tokens, h_state, encoder_outs):
    """tokens: (T,) int32 teacher-forced sequence, h_state: (L,1,HID),
    encoder_outs: (MAXLEN, 2H).  Returns ((T, WORDSIZE) log-softmax rows,
    final hidden (L,1,HID))."""
    tokens = jnp.asarray(tokens, jnp.int32).reshape(-1)
    T = tokens.shape[0]
    hflat = h_state.astype(jnp.float32).reshape(1, L * HID)
    enc_pad = jnp.zeros((MAXLEN_PAD, ENC_FEAT), jnp.float32).at[:MAXLEN, :].set(
        encoder_outs.astype(jnp.float32))

    outs, hfinal = pl.pallas_call(
        _attention_decoder_kernel,
        out_shape=(jax.ShapeDtypeStruct((T, 1, 128), jnp.float32),
                   jax.ShapeDtypeStruct((1, 128), jnp.float32)),
        grid_spec=pltpu.PrefetchScalarGridSpec(
            num_scalar_prefetch=1,                # token sequence -> SMEM
            grid=(T,),
            in_specs=[
                pl.BlockSpec((1, L * HID), lambda t, tok: (0, 0)),        # hflat (once)
                pl.BlockSpec((MAXLEN_PAD, ENC_FEAT), lambda t, tok: (0, 0)),  # enc (once)
                pl.BlockSpec((W_ROWS, 128), lambda t, tok: (0, 0)),       # W slab (once)
                pl.BlockSpec((WHH_ROWS, L * H3), lambda t, tok: (0, 0)),  # WHH slab (once)
            ],
            out_specs=(
                pl.BlockSpec((1, 1, 128), lambda t, tok: (t, 0, 0)),      # per-step logits
                pl.BlockSpec((1, 128), lambda t, tok: (0, 0)),            # final hidden
            ),
            scratch_shapes=[pltpu.VMEM((1, 128), jnp.float32)],           # hidden carry
        ),
        compiler_params=pltpu.CompilerParams(
            dimension_semantics=("arbitrary",)),  # steps are strictly sequential
    )(tokens, hflat, enc_pad, prepped["W"], prepped["WHH"])

    out = outs[:, 0, :WORDSIZE]
    return out, hfinal.reshape(L, 1, HID)


def attention_decoder_forward(prepped, x_idx, h_state, encoder_outs):
    """Single-step module-equivalent API (T == 1)."""
    tokens = jnp.asarray(x_idx, jnp.int32).reshape(1)
    out, h_new = attention_decoder_decode(prepped, tokens, h_state, encoder_outs)
    return out, h_new


# ----- pure-JAX reference (mirrors the PyTorch forward exactly) ----------------
def reference_forward(params, x_idx, h_state, encoder_outs):
    emb = params["embedding"][x_idx][None, :]
    pre = jnp.concatenate([h_state.reshape(1, -1), emb], axis=1)
    logits = pre @ params["w_attn"].T + params["b_attn"]
    attn_w = jax.nn.softmax(logits, axis=1)
    attn_app = attn_w @ encoder_outs
    comb_in = jnp.concatenate([emb, attn_app], axis=1)
    x = jax.nn.relu(comb_in @ params["w_comb"].T + params["b_comb"])
    h = h_state.reshape(L, HID)
    hs = []
    for l in range(L):
        gi = x @ params["gru_w_ih"][l].T + params["gru_b_ih"][l]
        gh = h[l:l + 1] @ params["gru_w_hh"][l].T + params["gru_b_hh"][l]
        r = jax.nn.sigmoid(gi[:, :HID] + gh[:, :HID])
        z = jax.nn.sigmoid(gi[:, HID:2 * HID] + gh[:, HID:2 * HID])
        n = jnp.tanh(gi[:, 2 * HID:] + r * gh[:, 2 * HID:])
        h_new = (1.0 - z) * n + z * h[l:l + 1]
        hs.append(h_new)
        x = h_new
    lo = x @ params["w_lo"].T + params["b_lo"]
    out = jax.nn.log_softmax(lo, axis=1)
    return out, jnp.concatenate(hs, axis=0).reshape(L, 1, HID)


# ----- deterministic parameter init --------------------------------------------
def init_params(key):
    def uni(k, shape, fan_in):
        b = 1.0 / np.sqrt(fan_in)
        return jax.random.uniform(k, shape, jnp.float32, -b, b)

    ks = list(jax.random.split(key, 8 + 4 * L))
    p = {}
    p["embedding"] = jax.random.normal(ks[0], (WORDSIZE, EMB), jnp.float32)
    attn_in = EMB + HID * L
    p["w_attn"] = uni(ks[1], (MAXLEN, attn_in), attn_in)
    p["b_attn"] = uni(ks[2], (MAXLEN,), attn_in)
    comb_in = EMB + ENC_FEAT
    p["w_comb"] = uni(ks[3], (EMB, comb_in), comb_in)
    p["b_comb"] = uni(ks[4], (EMB,), comb_in)
    p["w_lo"] = uni(ks[5], (WORDSIZE, HID), HID)
    p["b_lo"] = uni(ks[6], (WORDSIZE,), HID)
    gw_ih, gw_hh, gb_ih, gb_hh = [], [], [], []
    for l in range(L):
        in_l = EMB if l == 0 else HID
        base = 7 + 4 * l
        gw_ih.append(uni(ks[base + 0], (3 * HID, in_l), HID))
        gw_hh.append(uni(ks[base + 1], (3 * HID, HID), HID))
        gb_ih.append(uni(ks[base + 2], (3 * HID,), HID))
        gb_hh.append(uni(ks[base + 3], (3 * HID,), HID))
    p["gru_w_ih"], p["gru_w_hh"] = gw_ih, gw_hh
    p["gru_b_ih"], p["gru_b_hh"] = gb_ih, gb_hh
    return p


if __name__ == "__main__":
    key = jax.random.PRNGKey(0)
    kp, kh, ke, kt = jax.random.split(key, 4)
    params = init_params(kp)
    prepped = prepare_params(params)                            # one-time weight packing

    h_state = jax.random.normal(kh, (L, 1, HID), jnp.float32)   # GRU hidden
    encoder_outs = jax.random.normal(ke, (MAXLEN, ENC_FEAT), jnp.float32)
    T = 6
    tokens = jax.random.randint(kt, (T,), 0, WORDSIZE, jnp.int32)

    # --- fused multi-step decode: weights DMA'd once, hidden carried in VMEM ---
    outs, h_final = attention_decoder_decode(prepped, tokens, h_state, encoder_outs)
    outs, h_final = jax.block_until_ready(outs), jax.block_until_ready(h_final)

    # --- step-by-step pure-JAX reference (module forward applied T times) ------
    ref_outs = []
    h_ref = h_state
    for t in range(T):
        o, h_ref = reference_forward(params, int(tokens[t]), h_ref, encoder_outs)
        ref_outs.append(o)
    ref_outs = jnp.concatenate(ref_outs, axis=0)

    np.testing.assert_allclose(np.asarray(outs), np.asarray(ref_outs), rtol=1e-5, atol=1e-5)
    np.testing.assert_allclose(np.asarray(h_final), np.asarray(h_ref), rtol=1e-5, atol=1e-5)

    # --- single-step module-equivalent API (T == 1) -----------------------------
    out1, h1 = attention_decoder_forward(prepped, tokens[0], h_state, encoder_outs)
    out1, h1 = jax.block_until_ready(out1), jax.block_until_ready(h1)
    ref1, refh1 = reference_forward(params, int(tokens[0]), h_state, encoder_outs)
    np.testing.assert_allclose(np.asarray(out1), np.asarray(ref1), rtol=1e-5, atol=1e-5)
    np.testing.assert_allclose(np.asarray(h1), np.asarray(refh1), rtol=1e-5, atol=1e-5)

    print("KERNEL_OK")
</pallas_src>

<mosaic_0001>
module attributes {stable_mosaic.version = 11 : i64} {
  func.func @_attention_decoder_kernel(%arg0: i32, %arg1: memref<6xi32, #tpu.memory_space<smem>>, %arg2: memref<1x128xf32, #tpu.memory_space<vmem>>, %arg3: memref<16x64xf32, #tpu.memory_space<vmem>>, %arg4: memref<464x128xf32, #tpu.memory_space<vmem>>, %arg5: memref<136x384xf32, #tpu.memory_space<vmem>>, %arg6: memref<1x1x128xf32, #tpu.memory_space<vmem>>, %arg7: memref<1x128xf32, #tpu.memory_space<vmem>>, %arg8: memref<1x128xf32, #tpu.memory_space<vmem>>) attributes {dimension_semantics = [#tpu.dimension_semantics<arbitrary>], iteration_bounds = array<i64: 6>, scalar_prefetch = 1 : i64, scratch_operands = 1 : i64, tpu.core_type = #tpu.core_type<tc>, window_params = [{pipeline_mode = #tpu.pipeline_mode<synchronous>, transform_indices = @transform_0, window_bounds = array<i64: 1, 128>}, {pipeline_mode = #tpu.pipeline_mode<synchronous>, transform_indices = @transform_1, window_bounds = array<i64: 16, 64>}, {pipeline_mode = #tpu.pipeline_mode<synchronous>, transform_indices = @transform_2, window_bounds = array<i64: 464, 128>}, {pipeline_mode = #tpu.pipeline_mode<synchronous>, transform_indices = @transform_3, window_bounds = array<i64: 136, 384>}, {transform_indices = @transform_4, window_bounds = array<i64: 1, 1, 128>}, {pipeline_mode = #tpu.pipeline_mode<synchronous>, transform_indices = @transform_5, window_bounds = array<i64: 1, 128>}]} {
    %c0_i32 = arith.constant 0 : i32
    %0 = arith.cmpi eq, %arg0, %c0_i32 : i32
    %1 = arith.extui %0 : i1 to i32
    %c0_i32_0 = arith.constant 0 : i32
    %2 = arith.cmpi ne, %1, %c0_i32_0 : i32
    scf.if %2 {
      %c0_54 = arith.constant 0 : index
      %c0_55 = arith.constant 0 : index
      %166 = vector.load %arg2[%c0_54, %c0_55] : memref<1x128xf32, #tpu.memory_space<vmem>>, vector<1x128xf32>
      %c0_56 = arith.constant 0 : index
      %c0_57 = arith.constant 0 : index
      %167 = vector.load %arg8[%c0_56, %c0_57] : memref<1x128xf32, #tpu.memory_space<vmem>>, vector<1x128xf32>
      tpu.vector_store %arg8[%c0_56, %c0_57], %166 {strides = array<i32>} : memref<1x128xf32, #tpu.memory_space<vmem>>, vector<1x128xf32>,
    } else {
    }
    %3 = arith.index_cast %arg0 : i32 to index
    %4 = memref.load %arg1[%3] : memref<6xi32, #tpu.memory_space<smem>>
    %c0 = arith.constant 0 : index
    %c0_1 = arith.constant 0 : index
    %5 = vector.load %arg8[%c0, %c0_1] : memref<1x128xf32, #tpu.memory_space<vmem>>, vector<1x128xf32>
    %6 = arith.index_cast %4 : i32 to index
    %c0_2 = arith.constant 0 : index
    %7 = vector.load %arg4[%6, %c0_2] : memref<464x128xf32, #tpu.memory_space<vmem>>, vector<1x128xf32>
    %8 = vector.extract_strided_slice %7 {offsets = [0, 0], sizes = [1, 16], strides = [1, 1]} : vector<1x128xf32> to vector<1x16xf32>
    %c64 = arith.constant 64 : index
    %c0_3 = arith.constant 0 : index
    %9 = vector.load %arg4[%c64, %c0_3] : memref<464x128xf32, #tpu.memory_space<vmem>>, vector<128x128xf32>
    %cst = arith.constant dense<0.000000e+00> : vector<1x128xf32>
    %10 = tpu.matmul %5, %9, %cst {dimension_numbers = #tpu.dot_dimension_numbers<[1], [0], [0], [1], [0, 0, 1, 1], [], []>} : vector<1x128xf32>, vector<128x128xf32>, vector<1x128xf32> -> vector<1x128xf32>
    %c192 = arith.constant 192 : index
    %c0_4 = arith.constant 0 : index
    %11 = vector.load %arg4[%c192, %c0_4] : memref<464x128xf32, #tpu.memory_space<vmem>>, vector<16x128xf32>
    %cst_5 = arith.constant dense<0.000000e+00> : vector<1x128xf32>
    %12 = tpu.matmul %8, %11, %cst_5 {dimension_numbers = #tpu.dot_dimension_numbers<[1], [0], [0], [1], [0, 0, 1, 1], [], []>} : vector<1x16xf32>, vector<16x128xf32>, vector<1x128xf32> -> vector<1x128xf32>
    %13 = arith.addf %10, %12 : vector<1x128xf32>
    %c208 = arith.constant 208 : index
    %c0_6 = arith.constant 0 : index
    %14 = vector.load %arg4[%c208, %c0_6] : memref<464x128xf32, #tpu.memory_space<vmem>>, vector<1x128xf32>
    %15 = arith.addf %13, %14 : vector<1x128xf32>
    %cst_7 = arith.constant dense<0xFF800000> : vector<1xf32>
    %16 = vector.multi_reduction <maximumf>, %15, %cst_7 [1] : vector<1x128xf32> to vector<1xf32>
    %17 = vector.shape_cast %16 : vector<1xf32> to vector<1x1xf32>
    %18 = vector.broadcast %17 : vector<1x1xf32> to vector<1x128xf32>
    %19 = arith.subf %15, %18 : vector<1x128xf32>
    %20 = math.exp %19 : vector<1x128xf32>
    %cst_8 = arith.constant dense<0.000000e+00> : vector<1xf32>
    %21 = vector.multi_reduction <add>, %20, %cst_8 [1] : vector<1x128xf32> to vector<1xf32>
    %22 = vector.shape_cast %21 : vector<1xf32> to vector<1x1xf32>
    %23 = vector.extract_strided_slice %20 {offsets = [0, 0], sizes = [1, 16], strides = [1, 1]} : vector<1x128xf32> to vector<1x16xf32>
    %c0_9 = arith.constant 0 : index
    %c0_10 = arith.constant 0 : index
    %24 = vector.load %arg3[%c0_9, %c0_10] : memref<16x64xf32, #tpu.memory_space<vmem>>, vector<16x64xf32>
    %cst_11 = arith.constant dense<0.000000e+00> : vector<1x64xf32>
    %25 = tpu.matmul %23, %24, %cst_11 {dimension_numbers = #tpu.dot_dimension_numbers<[1], [0], [0], [1], [0, 0, 1, 1], [], []>} : vector<1x16xf32>, vector<16x64xf32>, vector<1x64xf32> -> vector<1x64xf32>
    %26 = tpu.reciprocal %22 : vector<1x1xf32> -> vector<1x1xf32>
    %27 = vector.broadcast %26 : vector<1x1xf32> to vector<1x64xf32>
    %28 = arith.mulf %25, %27 : vector<1x64xf32>
    %c216 = arith.constant 216 : index
    %c0_12 = arith.constant 0 : index
    %29 = vector.load %arg4[%c216, %c0_12] : memref<464x128xf32, #tpu.memory_space<vmem>>, vector<16x16xf32>
    %cst_13 = arith.constant dense<0.000000e+00> : vector<1x16xf32>
    %30 = tpu.matmul %8, %29, %cst_13 {dimension_numbers = #tpu.dot_dimension_numbers<[1], [0], [0], [1], [0, 0, 1, 1], [], []>} : vector<1x16xf32>, vector<16x16xf32>, vector<1x16xf32> -> vector<1x16xf32>
    %c232 = arith.constant 232 : index
    %c0_14 = arith.constant 0 : index
    %31 = vector.load %arg4[%c232, %c0_14] : memref<464x128xf32, #tpu.memory_space<vmem>>, vector<64x16xf32>
    %cst_15 = arith.constant dense<0.000000e+00> : vector<1x16xf32>
    %32 = tpu.matmul %28, %31, %cst_15 {dimension_numbers = #tpu.dot_dimension_numbers<[1], [0], [0], [1], [0, 0, 1, 1], [], []>} : vector<1x64xf32>, vector<64x16xf32>, vector<1x16xf32> -> vector<1x16xf32>
    %33 = arith.addf %30, %32 : vector<1x16xf32>
    %c296 = arith.constant 296 : index
    %c0_16 = arith.constant 0 : index
    %34 = vector.load %arg4[%c296, %c0_16] : memref<464x128xf32, #tpu.memory_space<vmem>>, vector<1x16xf32>
    %35 = arith.addf %33, %34 : vector<1x16xf32>
    %cst_17 = arith.constant 0.000000e+00 : f32
    %36 = vector.broadcast %cst_17 : f32 to vector<1x16xf32>
    %37 = arith.maximumf %35, %36 : vector<1x16xf32>
    %c0_18 = arith.constant 0 : index
    %c0_19 = arith.constant 0 : index
    %38 = vector.load %arg5[%c0_18, %c0_19] : memref<136x384xf32, #tpu.memory_space<vmem>>, vector<128x384xf32>
    %cst_20 = arith.constant dense<0.000000e+00> : vector<1x384xf32>
    %39 = tpu.matmul %5, %38, %cst_20 {dimension_numbers = #tpu.dot_dimension_numbers<[1], [0], [0], [1], [0, 0, 1, 1], [], []>} : vector<1x128xf32>, vector<128x384xf32>, vector<1x384xf32> -> vector<1x384xf32>
    %c128 = arith.constant 128 : index
    %c0_21 = arith.constant 0 : index
    %40 = vector.load %arg5[%c128, %c0_21] : memref<136x384xf32, #tpu.memory_space<vmem>>, vector<1x384xf32>
    %41 = arith.addf %39, %40 : vector<1x384xf32>
    %c304 = arith.constant 304 : index
    %c0_22 = arith.constant 0 : index
    %42 = vector.load %arg4[%c304, %c0_22] : memref<464x128xf32, #tpu.memory_space<vmem>>, vector<16x96xf32>
    %cst_23 = arith.constant dense<0.000000e+00> : vector<1x96xf32>
    %43 = tpu.matmul %37, %42, %cst_23 {dimension_numbers = #tpu.dot_dimension_numbers<[1], [0], [0], [1], [0, 0, 1, 1], [], []>} : vector<1x16xf32>, vector<16x96xf32>, vector<1x96xf32> -> vector<1x96xf32>
    %c416 = arith.constant 416 : index
    %c0_24 = arith.constant 0 : index
    %44 = vector.load %arg4[%c416, %c0_24] : memref<464x128xf32, #tpu.memory_space<vmem>>, vector<1x96xf32>
    %45 = arith.addf %43, %44 : vector<1x96xf32>
    %46 = vector.extract_strided_slice %41 {offsets = [0, 0], sizes = [1, 96], strides = [1, 1]} : vector<1x384xf32> to vector<1x96xf32>
    %47 = vector.extract_strided_slice %45 {offsets = [0, 0], sizes = [1, 64], strides = [1, 1]} : vector<1x96xf32> to vector<1x64xf32>
    %48 = vector.extract_strided_slice %46 {offsets = [0, 0], sizes = [1, 64], strides = [1, 1]} : vector<1x96xf32> to vector<1x64xf32>
    %49 = arith.addf %47, %48 : vector<1x64xf32>
    %50 = arith.negf %49 : vector<1x64xf32>
    %51 = math.exp %50 : vector<1x64xf32>
    %cst_25 = arith.constant 1.000000e+00 : f32
    %52 = vector.broadcast %cst_25 : f32 to vector<1x64xf32>
    %53 = arith.addf %52, %51 : vector<1x64xf32>
    %54 = arith.divf %52, %53 : vector<1x64xf32>
    %55 = vector.extract_strided_slice %54 {offsets = [0, 0], sizes = [1, 32], strides = [1, 1]} : vector<1x64xf32> to vector<1x32xf32>
    %56 = vector.extract_strided_slice %54 {offsets = [0, 32], sizes = [1, 32], strides = [1, 1]} : vector<1x64xf32> to vector<1x32xf32>
    %57 = vector.extract_strided_slice %45 {offsets = [0, 64], sizes = [1, 32], strides = [1, 1]} : vector<1x96xf32> to vector<1x32xf32>
    %58 = vector.extract_strided_slice %46 {offsets = [0, 64], sizes = [1, 32], strides = [1, 1]} : vector<1x96xf32> to vector<1x32xf32>
    %59 = arith.mulf %55, %58 : vector<1x32xf32>
    %60 = arith.addf %57, %59 : vector<1x32xf32>
    %61 = math.tanh %60 : vector<1x32xf32>
    %62 = vector.extract_strided_slice %5 {offsets = [0, 0], sizes = [1, 32], strides = [1, 1]} : vector<1x128xf32> to vector<1x32xf32>
    %cst_26 = arith.constant 1.000000e+00 : f32
    %63 = vector.broadcast %cst_26 : f32 to vector<1x32xf32>
    %64 = arith.subf %63, %56 : vector<1x32xf32>
    %65 = arith.mulf %64, %61 : vector<1x32xf32>
    %66 = arith.mulf %56, %62 : vector<1x32xf32>
    %67 = arith.addf %65, %66 : vector<1x32xf32>
    %c320 = arith.constant 320 : index
    %c0_27 = arith.constant 0 : index
    %68 = vector.load %arg4[%c320, %c0_27] : memref<464x128xf32, #tpu.memory_space<vmem>>, vector<32x96xf32>
    %cst_28 = arith.constant dense<0.000000e+00> : vector<1x96xf32>
    %69 = tpu.matmul %67, %68, %cst_28 {dimension_numbers = #tpu.dot_dimension_numbers<[1], [0], [0], [1], [0, 0, 1, 1], [], []>} : vector<1x32xf32>, vector<32x96xf32>, vector<1x96xf32> -> vector<1x96xf32>
    %c417 = arith.constant 417 : index
    %c0_29 = arith.constant 0 : index
    %70 = vector.load %arg4[%c417, %c0_29] : memref<464x128xf32, #tpu.memory_space<vmem>>, vector<1x96xf32>
    %71 = arith.addf %69, %70 : vector<1x96xf32>
    %72 = vector.extract_strided_slice %41 {offsets = [0, 96], sizes = [1, 96], strides = [1, 1]} : vector<1x384xf32> to vector<1x96xf32>
    %73 = vector.extract_strided_slice %71 {offsets = [0, 0], sizes = [1, 64], strides = [1, 1]} : vector<1x96xf32> to vector<1x64xf32>
    %74 = vector.extract_strided_slice %72 {offsets = [0, 0], sizes = [1, 64], strides = [1, 1]} : vector<1x96xf32> to vector<1x64xf32>
    %75 = arith.addf %73, %74 : vector<1x64xf32>
    %76 = arith.negf %75 : vector<1x64xf32>
    %77 = math.exp %76 : vector<1x64xf32>
    %cst_30 = arith.constant 1.000000e+00 : f32
    %78 = vector.broadcast %cst_30 : f32 to vector<1x64xf32>
    %79 = arith.addf %78, %77 : vector<1x64xf32>
    %80 = arith.divf %78, %79 : vector<1x64xf32>
    %81 = vector.extract_strided_slice %80 {offsets = [0, 0], sizes = [1, 32], strides = [1, 1]} : vector<1x64xf32> to vector<1x32xf32>
    %82 = vector.extract_strided_slice %80 {offsets = [0, 32], sizes = [1, 32], strides = [1, 1]} : vector<1x64xf32> to vector<1x32xf32>
    %83 = vector.extract_strided_slice %71 {offsets = [0, 64], sizes = [1, 32], strides = [1, 1]} : vector<1x96xf32> to vector<1x32xf32>
    %84 = vector.extract_strided_slice %72 {offsets = [0, 64], sizes = [1, 32], strides = [1, 1]} : vector<1x96xf32> to vector<1x32xf32>
    %85 = arith.mulf %81, %84 : vector<1x32xf32>
    %86 = arith.addf %83, %85 : vector<1x32xf32>
    %87 = math.tanh %86 : vector<1x32xf32>
    %88 = vector.extract_strided_slice %5 {offsets = [0, 32], sizes = [1, 32], strides = [1, 1]} : vector<1x128xf32> to vector<1x32xf32>
    %cst_31 = arith.constant 1.000000e+00 : f32
    %89 = vector.broadcast %cst_31 : f32 to vector<1x32xf32>
    %90 = arith.subf %89, %82 : vector<1x32xf32>
    %91 = arith.mulf %90, %87 : vector<1x32xf32>
    %92 = arith.mulf %82, %88 : vector<1x32xf32>
    %93 = arith.addf %91, %92 : vector<1x32xf32>
    %c352 = arith.constant 352 : index
    %c0_32 = arith.constant 0 : index
    %94 = vector.load %arg4[%c352, %c0_32] : memref<464x128xf32, #tpu.memory_space<vmem>>, vector<32x96xf32>
    %cst_33 = arith.constant dense<0.000000e+00> : vector<1x96xf32>
    %95 = tpu.matmul %93, %94, %cst_33 {dimension_numbers = #tpu.dot_dimension_numbers<[1], [0], [0], [1], [0, 0, 1, 1], [], []>} : vector<1x32xf32>, vector<32x96xf32>, vector<1x96xf32> -> vector<1x96xf32>
    %c418 = arith.constant 418 : index
    %c0_34 = arith.constant 0 : index
    %96 = vector.load %arg4[%c418, %c0_34] : memref<464x128xf32, #tpu.memory_space<vmem>>, vector<1x96xf32>
    %97 = arith.addf %95, %96 : vector<1x96xf32>
    %98 = vector.extract_strided_slice %41 {offsets = [0, 192], sizes = [1, 96], strides = [1, 1]} : vector<1x384xf32> to vector<1x96xf32>
    %99 = vector.extract_strided_slice %97 {offsets = [0, 0], sizes = [1, 64], strides = [1, 1]} : vector<1x96xf32> to vector<1x64xf32>
    %100 = vector.extract_strided_slice %98 {offsets = [0, 0], sizes = [1, 64], strides = [1, 1]} : vector<1x96xf32> to vector<1x64xf32>
    %101 = arith.addf %99, %100 : vector<1x64xf32>
    %102 = arith.negf %101 : vector<1x64xf32>
    %103 = math.exp %102 : vector<1x64xf32>
    %cst_35 = arith.constant 1.000000e+00 : f32
    %104 = vector.broadcast %cst_35 : f32 to vector<1x64xf32>
    %105 = arith.addf %104, %103 : vector<1x64xf32>
    %106 = arith.divf %104, %105 : vector<1x64xf32>
    %107 = vector.extract_strided_slice %106 {offsets = [0, 0], sizes = [1, 32], strides = [1, 1]} : vector<1x64xf32> to vector<1x32xf32>
    %108 = vector.extract_strided_slice %106 {offsets = [0, 32], sizes = [1, 32], strides = [1, 1]} : vector<1x64xf32> to vector<1x32xf32>
    %109 = vector.extract_strided_slice %97 {offsets = [0, 64], sizes = [1, 32], strides = [1, 1]} : vector<1x96xf32> to vector<1x32xf32>
    %110 = vector.extract_strided_slice %98 {offsets = [0, 64], sizes = [1, 32], strides = [1, 1]} : vector<1x96xf32> to vector<1x32xf32>
    %111 = arith.mulf %107, %110 : vector<1x32xf32>
    %112 = arith.addf %109, %111 : vector<1x32xf32>
    %113 = math.tanh %112 : vector<1x32xf32>
    %114 = vector.extract_strided_slice %5 {offsets = [0, 64], sizes = [1, 32], strides = [1, 1]} : vector<1x128xf32> to vector<1x32xf32>
    %cst_36 = arith.constant 1.000000e+00 : f32
    %115 = vector.broadcast %cst_36 : f32 to vector<1x32xf32>
    %116 = arith.subf %115, %108 : vector<1x32xf32>
    %117 = arith.mulf %116, %113 : vector<1x32xf32>
    %118 = arith.mulf %108, %114 : vector<1x32xf32>
    %119 = arith.addf %117, %118 : vector<1x32xf32>
    %c384 = arith.constant 384 : index
    %c0_37 = arith.constant 0 : index
    %120 = vector.load %arg4[%c384, %c0_37] : memref<464x128xf32, #tpu.memory_space<vmem>>, vector<32x96xf32>
    %cst_38 = arith.constant dense<0.000000e+00> : vector<1x96xf32>
    %121 = tpu.matmul %119, %120, %cst_38 {dimension_numbers = #tpu.dot_dimension_numbers<[1], [0], [0], [1], [0, 0, 1, 1], [], []>} : vector<1x32xf32>, vector<32x96xf32>, vector<1x96xf32> -> vector<1x96xf32>
    %c419 = arith.constant 419 : index
    %c0_39 = arith.constant 0 : index
    %122 = vector.load %arg4[%c419, %c0_39] : memref<464x128xf32, #tpu.memory_space<vmem>>, vector<1x96xf32>
    %123 = arith.addf %121, %122 : vector<1x96xf32>
    %124 = vector.extract_strided_slice %41 {offsets = [0, 288], sizes = [1, 96], strides = [1, 1]} : vector<1x384xf32> to vector<1x96xf32>
    %125 = vector.extract_strided_slice %123 {offsets = [0, 0], sizes = [1, 64], strides = [1, 1]} : vector<1x96xf32> to vector<1x64xf32>
    %126 = vector.extract_strided_slice %124 {offsets = [0, 0], sizes = [1, 64], strides = [1, 1]} : vector<1x96xf32> to vector<1x64xf32>
    %127 = arith.addf %125, %126 : vector<1x64xf32>
    %128 = arith.negf %127 : vector<1x64xf32>
    %129 = math.exp %128 : vector<1x64xf32>
    %cst_40 = arith.constant 1.000000e+00 : f32
    %130 = vector.broadcast %cst_40 : f32 to vector<1x64xf32>
    %131 = arith.addf %130, %129 : vector<1x64xf32>
    %132 = arith.divf %130, %131 : vector<1x64xf32>
    %133 = vector.extract_strided_slice %132 {offsets = [0, 0], sizes = [1, 32], strides = [1, 1]} : vector<1x64xf32> to vector<1x32xf32>
    %134 = vector.extract_strided_slice %132 {offsets = [0, 32], sizes = [1, 32], strides = [1, 1]} : vector<1x64xf32> to vector<1x32xf32>
    %135 = vector.extract_strided_slice %123 {offsets = [0, 64], sizes = [1, 32], strides = [1, 1]} : vector<1x96xf32> to vector<1x32xf32>
    %136 = vector.extract_strided_slice %124 {offsets = [0, 64], sizes = [1, 32], strides = [1, 1]} : vector<1x96xf32> to vector<1x32xf32>
    %137 = arith.mulf %133, %136 : vector<1x32xf32>
    %138 = arith.addf %135, %137 : vector<1x32xf32>
    %139 = math.tanh %138 : vector<1x32xf32>
    %140 = vector.extract_strided_slice %5 {offsets = [0, 96], sizes = [1, 32], strides = [1, 1]} : vector<1x128xf32> to vector<1x32xf32>
    %cst_41 = arith.constant 1.000000e+00 : f32
    %141 = vector.broadcast %cst_41 : f32 to vector<1x32xf32>
    %142 = arith.subf %141, %134 : vector<1x32xf32>
    %143 = arith.mulf %142, %139 : vector<1x32xf32>
    %144 = arith.mulf %134, %140 : vector<1x32xf32>
    %145 = arith.addf %143, %144 : vector<1x32xf32>
    %146 = tpu.concatenate %67, %93, %119, %145 in 1 : vector<1x32xf32>, vector<1x32xf32>, vector<1x32xf32>, vector<1x32xf32> -> vector<1x128xf32>
    %c0_42 = arith.constant 0 : index
    %c0_43 = arith.constant 0 : index
    %147 = vector.load %arg8[%c0_42, %c0_43] : memref<1x128xf32, #tpu.memory_space<vmem>>, vector<1x128xf32>
    tpu.vector_store %arg8[%c0_42, %c0_43], %146 {strides = array<i32>} : memref<1x128xf32, #tpu.memory_space<vmem>>, vector<1x128xf32>,
    %c0_44 = arith.constant 0 : index
    %c0_45 = arith.constant 0 : index
    %148 = vector.load %arg7[%c0_44, %c0_45] : memref<1x128xf32, #tpu.memory_space<vmem>>, vector<1x128xf32>
    tpu.vector_store %arg7[%c0_44, %c0_45], %146 {strides = array<i32>} : memref<1x128xf32, #tpu.memory_space<vmem>>, vector<1x128xf32>,
    %c424 = arith.constant 424 : index
    %c0_46 = arith.constant 0 : index
    %149 = vector.load %arg4[%c424, %c0_46] : memref<464x128xf32, #tpu.memory_space<vmem>>, vector<32x128xf32>
    %cst_47 = arith.constant dense<0.000000e+00> : vector<1x128xf32>
    %150 = tpu.matmul %145, %149, %cst_47 {dimension_numbers = #tpu.dot_dimension_numbers<[1], [0], [0], [1], [0, 0, 1, 1], [], []>} : vector<1x32xf32>, vector<32x128xf32>, vector<1x128xf32> -> vector<1x128xf32>
    %c456 = arith.constant 456 : index
    %c0_48 = arith.constant 0 : index
    %151 = vector.load %arg4[%c456, %c0_48] : memref<464x128xf32, #tpu.memory_space<vmem>>, vector<1x128xf32>
    %152 = arith.addf %150, %151 : vector<1x128xf32>
    %cst_49 = arith.constant dense<0xFF800000> : vector<1xf32>
    %153 = vector.multi_reduction <maximumf>, %152, %cst_49 [1] : vector<1x128xf32> to vector<1xf32>
    %154 = vector.shape_cast %153 : vector<1xf32> to vector<1x1xf32>
    %155 = vector.broadcast %154 : vector<1x1xf32> to vector<1x128xf32>
    %156 = arith.subf %152, %155 : vector<1x128xf32>
    %157 = math.exp %156 : vector<1x128xf32>
    %cst_50 = arith.constant dense<0.000000e+00> : vector<1xf32>
    %158 = vector.multi_reduction <add>, %157, %cst_50 [1] : vector<1x128xf32> to vector<1xf32>
    %159 = vector.shape_cast %158 : vector<1xf32> to vector<1x1xf32>
    %160 = math.log %159 : vector<1x1xf32>
    %161 = arith.addf %160, %154 : vector<1x1xf32>
    %162 = vector.broadcast %161 : vector<1x1xf32> to vector<1x128xf32>
    %163 = arith.subf %152, %162 : vector<1x128xf32>
    %164 = vector.shape_cast %163 : vector<1x128xf32> to vector<1x1x128xf32>
    %c0_51 = arith.constant 0 : index
    %c0_52 = arith.constant 0 : index
    %c0_53 = arith.constant 0 : index
    %165 = vector.load %arg6[%c0_51, %c0_52, %c0_53] : memref<1x1x128xf32, #tpu.memory_space<vmem>>, vector<1x1x128xf32>
    tpu.vector_store %arg6[%c0_51, %c0_52, %c0_53], %164 {strides = array<i32>} : memref<1x1x128xf32, #tpu.memory_space<vmem>>, vector<1x1x128xf32>,
    return
  }
  func.func @transform_0(%arg0: i32, %arg1: memref<6xi32, #tpu.memory_space<smem>>) -> (i32, i32) {
    %c0_i32 = arith.constant 0 : i32
    %c0_i32_0 = arith.constant 0 : i32
    %c0_i32_1 = arith.constant 0 : i32
    return %c0_i32, %c0_i32_0 : i32, i32
  }
  func.func @transform_1(%arg0: i32, %arg1: memref<6xi32, #tpu.memory_space<smem>>) -> (i32, i32) {
    %c0_i32 = arith.constant 0 : i32
    %c0_i32_0 = arith.constant 0 : i32
    %c0_i32_1 = arith.constant 0 : i32
    return %c0_i32, %c0_i32_0 : i32, i32
  }
  func.func @transform_2(%arg0: i32, %arg1: memref<6xi32, #tpu.memory_space<smem>>) -> (i32, i32) {
    %c0_i32 = arith.constant 0 : i32
    %c0_i32_0 = arith.constant 0 : i32
    %c0_i32_1 = arith.constant 0 : i32
    return %c0_i32, %c0_i32_0 : i32, i32
  }
  func.func @transform_3(%arg0: i32, %arg1: memref<6xi32, #tpu.memory_space<smem>>) -> (i32, i32) {
    %c0_i32 = arith.constant 0 : i32
    %c0_i32_0 = arith.constant 0 : i32
    %c0_i32_1 = arith.constant 0 : i32
    return %c0_i32, %c0_i32_0 : i32, i32
  }
  func.func @transform_4(%arg0: i32, %arg1: memref<6xi32, #tpu.memory_space<smem>>) -> (i32, i32, i32) {
    %c0_i32 = arith.constant 0 : i32
    %c0_i32_0 = arith.constant 0 : i32
    %c0_i32_1 = arith.constant 0 : i32
    return %arg0, %c0_i32, %c0_i32_0 : i32, i32, i32
  }
  func.func @transform_5(%arg0: i32, %arg1: memref<6xi32, #tpu.memory_space<smem>>) -> (i32, i32) {
    %c0_i32 = arith.constant 0 : i32
    %c0_i32_0 = arith.constant 0 : i32
    %c0_i32_1 = arith.constant 0 : i32
    return %c0_i32, %c0_i32_0 : i32, i32
  }
}

</mosaic_0001>

<bundles_post_ra>
// kernel: attention_decoder_decode.1
= control target key start
LH: loop header
LB: loop body
LE: loop exit
PB: predicated region body
PF: predicated region fallthrough
CT: control target
= control target key end

     0   :  { %s1137_s24 = smov [#allocation4]   ;;  %s1326_s0 = inlined_call_operand.vmem [shape: s32[6], index: 0, kind: input, shape index: {}]   ;;  %s1327_s1 = inlined_call_operand.vmem [shape: f32[1,128], index: 1, kind: input, shape index: {}]   ;;  %s1328_s2 = inlined_call_operand.vmem [shape: f32[16,64], index: 2, kind: input, shape index: {}]   ;;  %s1329_s3 = inlined_call_operand.hbm [shape: f32[464,128], index: 3, kind: input, shape index: {}]   ;;  %s1330_s4 = inlined_call_operand.hbm [shape: f32[136,384], index: 4, kind: input, shape index: {}]   ;;  %s1331_s5 = inlined_call_operand.vmem [shape: f32[6,1,128], index: 5, kind: output, shape index: {0}]   ;;  %s1332_s6 = inlined_call_operand.vmem [shape: f32[1,128], index: 6, kind: output, shape index: {1}]  }
   0x1   :  { %s13_s23 = sshll.u32 %s1326_s0, 4  ;;  %s14_s23 = int_to_ptr.vmem [resolvable:$true] %s13_s23 }
   0x2   :  { %16 = dma.vmem_to_smem %s14_s23, 16, %s1137_s24, [#allocation3] }
   0x3   :  { %1123 = dma.done.wait [#allocation3], 16 }
   0x4   :  { %1124 = vsyncadd [#allocation3], 4294967280 }
   0x5   :  { %19 = sfence }
   0x6   :  { %20 = vsyncpa [#allocation6], 0 }
   0x7   :  { %21 = vsyncpa [#allocation8], 0  ;;  %s1185_s25 = smov 0  }
   0x8 LB: > { %s180_s0 = sshll.u32 %s1329_s3, 4  ;;  %s1194_s28 = sadd.s32 4294967295, %s1135_s25   ;;  %s1135_s25 = sphi %s1185_s25, %s27_s25   ;;  %s181_s0 = int_to_ptr.hbm [resolvable:$true] %s180_s0 }
   0x9   : > { %p955_p0 = scmp.ge.s32.totalorder %s1135_s25, 1  ;;  %p163_p1 = scmp.lt.s32.totalorder %s1135_s25, 7 }
   0xa   : > { %p956_p2 = scmp.ne.s32.totalorder %s1194_s28, 0  ;;  %p992_p3 = scmp.eq.s32.totalorder %s1194_s28, 0 }
   0xb   : > { %p1200_p4 = pnand %p955_p0, %p163_p1  ;;  %s1138_s30 = smov [#allocation5]  }
   0xc   : > { %s182_s7 = sshll.u32 %s1138_s30, 4  ;;  %s194_s10 = sshll.u32 %s1330_s4, 4  ;;  %s183_s7 = int_to_ptr.vmem [resolvable:$true] %s182_s7  ;;  %s195_s10 = int_to_ptr.hbm [resolvable:$true] %s194_s10 }
   0xd   : > { %p985_p5 = pneg %p1200_p4  ;;  %s1139_s11 = smov [#allocation7]  }
   0xe   : > { %s196_s12 = sshll.u32 %s1139_s11, 4  ;;  %s1140_s13 = smov 128   ;;  %s197_s12 = int_to_ptr.vmem [resolvable:$true] %s196_s12 }
   0xf   : > { %p986_p6 = pnand %p992_p3, %p985_p5  ;;  %s1141_s14 = smov 8  }
  0x10   : > { %s1142_s15 = smov 384   ;;  %s1143_s16 = smov 24  }
  0x11   : > { %988 = dma.hbm_to_vmem [thread:$0]  (!%p986_p6), %s181_s0, 7424, %s183_s7, [#allocation6], %s1140_s13, %s1140_s13, %s1141_s14  }
  0x12   : > { %991 = dma.hbm_to_vmem [thread:$0]  (!%p986_p6), %s195_s10, 6528, %s197_s12, [#allocation8], %s1142_s15, %s1142_s15, %s1143_s16  }
  0x13   : > { %212 = sbr.rel (%p1200_p4) target bundleno = 2957 (0xb8d), region = 36 }
  0x18   : > { %1126 = dma.done.wait (%p992_p3), [#allocation6], 7424  }
  0x19   : > { %1128 = vsyncadd (%p992_p3), [#allocation6], 4294959872 }
  0x1a   : > { %1130 = dma.done.wait (%p992_p3), [#allocation8], 6528  }
  0x1b   : > { %1132 = vsyncadd (%p992_p3), [#allocation8], 4294960768  ;;  %p239_p7 = scmp.lt.s32.totalorder %s1194_s28, 5  ;;  %245 = sbr.rel (%p956_p2) target bundleno = 34 (0x22), region = 48 }
  0x1d   : > { %s1223_s17 = scalar_select %p239_p7, %s1194_s28, 5 }
  0x1f   : > { %s241_s20 = scalar_lea.vmem %s1331_s5, %s1223_s17 }
  0x20   : > { %v246_v0 = vld [vmem:[%s1327_s1] sm:$0x1] }
  0x21   : > { %247 = vst [vmem:[#allocation2] sm:$0x1] %v246_v0 }
  0x22 PF: > { %v267_v1 = vld [vmem:[#allocation5 + $0xb8] sm:$0xff]  ;;  %v266_v2 = vld [vmem:[#allocation5 + $0xb0] sm:$0xff]  ;;  %s248_s23 = sld [smem:[#allocation4 + %s1194_s28]]  ;;  %v265_v3 = vld [vmem:[#allocation5 + $0xa8] sm:$0xff]  ;;  %vm270_vm0 = vcmask 130048   ;;  %vm316_vm1 = vcmask 1040384  }
  0x23   : > { %294 = vmatpush.msra.mxu1 %v267_v1  ;;  %v264_v4 = vld [vmem:[#allocation5 + $0xa0] sm:$0xff]  ;;  %v269_v5 = vld [vmem:[#allocation5 + $0xc8] sm:$0xff]  ;;  %v263_v7 = vld [vmem:[#allocation5 + $0x98] sm:$0xff]  ;;  %vm376_vm6 = vcmask 523264   ;;  %s1144_s29 = smov 64   ;;  %s1145_s30 = smov 32  }
  0x24   : > { %288 = vmatpush.msra.mxu0 %v269_v5  ;;  %v268_v6 = vld [vmem:[#allocation5 + $0xc0] sm:$0xff]  ;;  %v262_v9 = vld [vmem:[#allocation5 + $0x90] sm:$0xff]  ;;  %v261_v10 = vld [vmem:[#allocation5 + $0x88] sm:$0xff]  ;;  %s1146_s7 = smov 96   ;;  %vm618_vm11 = vcmask 261120  }
  0x25   : > { %295 = vmatpush.msra.mxu1 %v266_v2  ;;  %v260_v11 = vld [vmem:[#allocation5 + $0x80] sm:$0xff]  ;;  %v259_v12 = vld [vmem:[#allocation5 + $0x78] sm:$0xff]  ;;  %v258_v13 = vld [vmem:[#allocation5 + $0x70] sm:$0xff] }
  0x26   : > { %289 = vmatpush.msra.mxu0 %v268_v6  ;;  %v257_v14 = vld [vmem:[#allocation5 + $0x68] sm:$0xff]  ;;  %v256_v15 = vld [vmem:[#allocation5 + $0x60] sm:$0xff]  ;;  %v255_v16 = vld [vmem:[#allocation5 + $0x58] sm:$0xff] }
  0x27   : > { %296 = vmatpush.msra.mxu1 %v265_v3  ;;  %v254_v17 = vld [vmem:[#allocation5 + $0x50] sm:$0xff]  ;;  %v253_v18 = vld [vmem:[#allocation5 + $0x48] sm:$0xff]  ;;  %v252_v19 = vld [vmem:[#allocation5 + $0x40] sm:$0xff] }
  0x28   : > { %s250_s24 = scalar_lea.vmem [#allocation5], %s248_s23  ;;  %v1239_v20 = vld [vmem:[#allocation2] sm:$0x1]  ;;  %v314_v23 = vld [vmem:[#allocation5 + $0xd0] sm:$0x1]  ;;  %v327_v27 = vld [vmem:[%s1328_s2 + $0x8] sm:$0xff] }
  0x29   : > { %297 = vmatpush.msra.mxu1 %v264_v4  ;;  %v1235_v8 = vld [vmem:[%s250_s24] sm:$0x1]  ;;  %345 = vmatpush.msra.mxu2 %v327_v27  ;;  %v375_v34 = vld [vmem:[#allocation5 + $0x120] sm:$0xff]  ;;  %v373_v36 = vld [vmem:[#allocation5 + $0x110] sm:$0xff] }
  0x2a   : > { %962 = vmatmul.msk.f32.vlgmr.msra.gmra.mxu0 %vm270_vm0, %v1235_v8  ;;  %v326_v28 = vld [vmem:[%s1328_s2] sm:$0xff]  ;;  %388 = vmatpush.msra.mxu3 %v375_v34  ;;  %v372_v37 = vld [vmem:[#allocation5 + $0x108] sm:$0xff]  ;;  %v369_v40 = vld [vmem:[#allocation5 + $0xf0] sm:$0xff] }
  0x2b   : > { %298 = vmatpush.msra.mxu1 %v263_v7  ;;  %346 = vmatpush.msra.mxu2 %v326_v28  ;;  %v374_v35 = vld [vmem:[#allocation5 + $0x118] sm:$0xff]  ;;  %v371_v38 = vld [vmem:[#allocation5 + $0x100] sm:$0xff]  ;;  %v368_v42 = vld [vmem:[#allocation5 + $0xe8] sm:$0xff] }
  0x2c   : > { %389 = vmatpush.msra.mxu3 %v374_v35  ;;  %v370_v39 = vld [vmem:[#allocation5 + $0xf8] sm:$0xff]  ;;  %v367_v41 = vld [vmem:[#allocation5 + $0xe0] sm:$0xff]  ;;  %v462_v46 = vld [vmem:[#allocation7 + $0x138] sm:$0xff] }
  0x2d   : > { %299 = vmatpush.msra.mxu1 %v262_v9  ;;  %414 = vmatpush.msrb.mxu0 %v367_v41  ;;  %v366_v43 = vld [vmem:[#allocation5 + $0xd8] sm:$0xff]  ;;  %v465_v45 = vld [vmem:[#allocation7 + $0x150] sm:$0xff]  ;;  %v459_v47 = vld [vmem:[#allocation7 + $0x120] sm:$0xff] }
  0x2e   : > { %390 = vmatpush.msra.mxu3 %v373_v36  ;;  %v468_v44 = vld [vmem:[#allocation7 + $0x168] sm:$0xff]  ;;  %v453_v50 = vld [vmem:[#allocation7 + $0xf0] sm:$0xff]  ;;  %v450_v51 = vld [vmem:[#allocation7 + $0xd8] sm:$0xff] }
  0x2f   : > { %300 = vmatpush.msra.mxu1 %v261_v10  ;;  %415 = vmatpush.msrb.mxu0 %v366_v43  ;;  %v541_v48 = vld [vmem:[#allocation5 + $0x138] sm:$0xff]  ;;  %v447_v53 = vld [vmem:[#allocation7 + $0xc0] sm:$0xff]  ;;  %v441_v55 = vld [vmem:[#allocation7 + $0x90] sm:$0xff] }
  0x30   : > { %391 = vmatpush.msra.mxu3 %v372_v37  ;;  %480 = vmatpush.msrb.mxu2 %v468_v44  ;;  %v456_v49 = vld [vmem:[#allocation7 + $0x108] sm:$0xff]  ;;  %v438_v56 = vld [vmem:[#allocation7 + $0x78] sm:$0xff]  ;;  %v435_v59 = vld [vmem:[#allocation7 + $0x60] sm:$0xff] }
  0x31   : > { %301 = vmatpush.msra.mxu1 %v260_v11  ;;  %v444_v54 = vld [vmem:[#allocation7 + $0xa8] sm:$0xff]  ;;  %v429_v1 = vld [vmem:[#allocation7 + $0x30] sm:$0xff]  ;;  %v426_v3 = vld [vmem:[#allocation7 + $0x18] sm:$0xff] }
  0x32   : > { %392 = vmatpush.msra.mxu3 %v371_v38  ;;  %965 = vmatmul.msk.f32.vlgmr.msrb.gmra.mxu0 %vm270_vm0, %v1235_v8  ;;  %v432_v61 = vld [vmem:[#allocation7 + $0x48] sm:$0xff]  ;;  %v423_v6 = vld [vmem:[#allocation7] sm:$0xff]  ;;  %v454_v27 = vld [vmem:[#allocation7 + $0xf8] sm:$0xff] }
  0x33   : > { %302 = vmatpush.msra.mxu1 %v259_v12  ;;  %481 = vmatpush.msrb.mxu2 %v465_v45  ;;  %v540_v10 = vld [vmem:[#allocation5 + $0x130] sm:$0xff]  ;;  %v442_v34 = vld [vmem:[#allocation7 + $0x98] sm:$0xff]  ;;  %v436_v37 = vld [vmem:[#allocation7 + $0x68] sm:$0xff] }
  0x34   : > { %393 = vmatpush.msra.mxu3 %v370_v39  ;;  %v1255_v11 = vld [vmem:[#allocation7 + $0x180] ss:$8 sm:$0x7] }
  0x35   : > { %303 = vmatpush.msra.mxu1 %v258_v13  ;;  %482 = vmatpush.msrb.mxu2 %v462_v46  ;;  %v474_v12 = vperm.slane %v1255_v11, 0  ;;  %v451_v28 = vld [vmem:[#allocation7 + $0xe0] sm:$0xff]  ;;  %v433_v39 = vld [vmem:[#allocation7 + $0x50] sm:$0xff] }
  0x36   : > { %394 = vmatpush.msra.mxu3 %v369_v40  ;;  %v439_v36 = vld [vmem:[#allocation7 + $0x80] sm:$0xff]  ;;  %v430_v40 = vld [vmem:[#allocation7 + $0x38] sm:$0xff] }
  0x37   : > { %304 = vmatpush.msra.mxu1 %v257_v14  ;;  %483 = vmatpush.msrb.mxu2 %v459_v47  ;;  %v427_v41 = vld [vmem:[#allocation7 + $0x20] sm:$0xff] }
  0x38   : > { %395 = vmatpush.msra.mxu3 %v368_v42  ;;  %v424_v42 = vld [vmem:[#allocation7 + $0x8] sm:$0xff] }
  0x39   : > { %305 = vmatpush.msra.mxu1 %v256_v15  ;;  %484 = vmatpush.msrb.mxu2 %v456_v49  ;;  %v420_v15 = vld [vmem:[#allocation5 + $0x128] sm:$0x1] }
  0x3b   : > { %306 = vmatpush.msra.mxu1 %v255_v16  ;;  %485 = vmatpush.msrb.mxu2 %v453_v50 }
  0x3d   : > { %307 = vmatpush.msra.mxu1 %v254_v17  ;;  %486 = vmatpush.msrb.mxu2 %v450_v51 }
  0x3f   : > { %308 = vmatpush.msra.mxu1 %v253_v18  ;;  %487 = vmatpush.msrb.mxu2 %v447_v53 }
  0x41   : > { %309 = vmatpush.msra.mxu1 %v252_v19  ;;  %488 = vmatpush.msrb.mxu2 %v444_v54 }
  0x42   : > { %310 = vmatmul.f32.vlgmr.msra.gmra.mxu1 %v1239_v20 }
  0x43   : > { %560 = vmatpush.msrb.mxu1 %v541_v48  ;;  %489 = vmatpush.msrb.mxu2 %v441_v55 }
  0x45   : > { %490 = vmatpush.msrb.mxu2 %v438_v56  ;;  %561 = vmatpush.msrb.mxu1 %v540_v10 }
  0x47   : > { %491 = vmatpush.msrb.mxu2 %v435_v59 }
  0x49   : > { %492 = vmatpush.msrb.mxu2 %v432_v61 }
  0x4b   : > { %493 = vmatpush.msrb.mxu2 %v429_v1  ;;  %v612_v1 = vld [vmem:[#allocation5 + $0x150] sm:$0xff] }
  0x4d   : > { %494 = vmatpush.msrb.mxu2 %v426_v3  ;;  %v610_v3 = vld [vmem:[#allocation5 + $0x140] sm:$0xff] }
  0x4f   : > { %495 = vmatpush.msrb.mxu2 %v423_v6 }
  0xa7   : > { %v291_v21 = vpop.f32.mrf.mxu0 }
  0xaf   : > { %v417_v13 = vpop.f32.mrf.mxu0 }
  0xbf   : > { %v311_v22 = vpop.f32.mrf.mxu1 }
  0xc0   : > { %v312_v24 = vadd.f32 %v311_v22, %v291_v21  ;;  %v469_v22 = vld [vmem:[#allocation7 + $0x170] sm:$0xff] }
  0xc1   : > { %500 = vmatpush.msra.mxu0 %v469_v22 }
  0xc2   : > { %v315_v25 = vadd.f32 %v314_v23, %v312_v24  ;;  %v466_v23 = vld [vmem:[#allocation7 + $0x158] sm:$0xff]  ;;  %v463_v24 = vld [vmem:[#allocation7 + $0x140] sm:$0xff] }
  0xc3   : > { %501 = vmatpush.msra.mxu0 %v466_v23 }
  0xc4   : > { %v317_v26 = vsel %vm316_vm1, %v315_v25, -inf }
  0xc5   : > { %318 = vmax.xlane.f32.xlu0 %v317_v26  ;;  %502 = vmatpush.msra.mxu0 %v463_v24  ;;  %v457_v26 = vld [vmem:[#allocation7 + $0x110] sm:$0xff] }
 0x138   : > { %v319_v29 = vpop.xlane.xlu0 %318 }
 0x139   : > { %v320_v30 = vsub.f32 %v315_v25, %v319_v29  ;;  %v460_v25 = vld [vmem:[#allocation7 + $0x128] sm:$0xff] }
 0x13a   : > { %503 = vmatpush.msra.mxu0 %v460_v25  ;;  %v448_v29 = vld [vmem:[#allocation7 + $0xc8] sm:$0xff] }
 0x13b   : > { %v321_v31 = vmul.f32 1.442695, %v320_v30  ;;  %v445_v30 = vld [vmem:[#allocation7 + $0xb0] sm:$0xff] }
 0x13c   : > { %504 = vmatpush.msra.mxu0 %v457_v26 }
 0x13d   : > { %1015 = vpow2.f32 %v321_v31  ;;  %v542_v31 = vld [vmem:[#allocation5 + $0x1a0] sm:$0x1] }
 0x13e   : > { %505 = vmatpush.msra.mxu0 %v454_v27 }
 0x140   : > { %506 = vmatpush.msra.mxu0 %v451_v28 }
 0x142   : > { %507 = vmatpush.msra.mxu0 %v448_v29 }
 0x143   : > { %v1016_v32 = vpop.eup %1015 }
 0x144   : > { %963 = vmatmul.msk.f32.vlgmr.msra.gmra.mxu2 %vm270_vm0, %v1016_v32  ;;  %v323_v33 = vsel %vm316_vm1, %v1016_v32, 0.0  ;;  %508 = vmatpush.msra.mxu0 %v445_v30 }
 0x145   : > { %324 = vadd.xlane.f32.xlu0 %v323_v33 }
 0x146   : > { %509 = vmatpush.msra.mxu0 %v442_v34 }
 0x148   : > { %510 = vmatpush.msra.mxu0 %v439_v36 }
 0x14a   : > { %511 = vmatpush.msra.mxu0 %v436_v37 }
 0x14c   : > { %496 = vmatmul.f32.vlgmr.msrb.gmra.mxu2 %v1239_v20  ;;  %512 = vmatpush.msra.mxu0 %v433_v39  ;;  %v470_v39 = vld [vmem:[#allocation7 + $0x178] sm:$0xff] }
 0x14d   : > { %520 = vmatpush.msrb.mxu3 %v470_v39 }
 0x14e   : > { %513 = vmatpush.msra.mxu0 %v430_v40  ;;  %v688_v40 = vld [vmem:[#allocation5 + $0x170] sm:$0xff] }
 0x150   : > { %514 = vmatpush.msra.mxu0 %v427_v41  ;;  %v467_v41 = vld [vmem:[#allocation7 + $0x160] sm:$0xff] }
 0x151   : > { %521 = vmatpush.msrb.mxu3 %v467_v41 }
 0x152   : > { %515 = vmatpush.msra.mxu0 %v424_v42  ;;  %v687_v42 = vld [vmem:[#allocation5 + $0x168] sm:$0xff] }
 0x153   : > { %516 = vmatmul.f32.vlgmr.msra.gmra.mxu0 %v1239_v20 }
 0x1b8   : > { %v325_v52 = vpop.xlane.xlu0 %324 }
 0x1b9   : > { %1017 = vrcp.f32 %v325_v52  ;;  %v362_v62 = vand.u32 2147483648, %v325_v52  ;;  %v360_v0 = vand.u32 2147483647, %v325_v52  ;;  %vm356_vm3 = vweird.f32 %v325_v52 }
 0x1bb   : > { %v363_v4 = vor.u32 1.1754944e-38, %v362_v62  ;;  %vm361_vm5 = vcmp.eq.f32.partialorder %v360_v0, 8.507059e+37  ;;  %v613_v0 = vld [vmem:[#allocation5 + $0x158] sm:$0xff] }
 0x1bc   : > { %633 = vmatpush.msra.mxu2 %v613_v0 }
 0x1be   : > { %634 = vmatpush.msra.mxu2 %v612_v1  ;;  %v476_v1 = vperm.slane %v1255_v11, 2 }
 0x1bf   : > { %v1018_v57 = vpop.eup %1017 }
 0x1c0   : > { %v352_v58 = vmul.f32 %v1018_v57, %v325_v52  ;;  %vm357_vm2 = vweird.f32 %v1018_v57 }
 0x1c1   : > { %vm358_vm4 = vmor %vm356_vm3, %vm357_vm2 }
 0x1c2   : > { %v353_v60 = vsub.f32 1.0, %v352_v58 }
 0x1c4   : > { %v354_v63 = vmul.f32 %v1018_v57, %v353_v60 }
 0x1c6   : > { %v355_v2 = vadd.f32 %v1018_v57, %v354_v63  ;;  %v1271_v63 = vld [vmem:[#allocation2] ss:$0 sm:$0xff] }
 0x1c7   : > { %v348_v7 = vpop.f32.mrf.mxu2 }
 0x1c8   : > { %v359_v5 = vsel %vm358_vm4, %v1018_v57, %v355_v2  ;;  %v475_v57 = vperm.slane %v1255_v11, 1  ;;  %v611_v2 = vld [vmem:[#allocation5 + $0x148] sm:$0xff] }
 0x1c9   : > { %v364_v8 = vsel %vm361_vm5, %v363_v4, %v359_v5  ;;  %635 = vmatpush.msra.mxu2 %v611_v2  ;;  %v690_v2 = vld [vmem:[#allocation5 + $0x1a2] sm:$0x1] }
 0x1ca   : > { %v365_v9 = vmul.f32 %v364_v8, %v348_v7 }
 0x1cb   : > { %636 = vmatpush.msra.mxu2 %v610_v3 }
 0x1cc   : > { %964 = vmatmul.msk.f32.vlgmr.msra.gmra.mxu3 %vm376_vm6, %v365_v9 }
 0x1cf   : > { %v497_v16 = vpop.f32.mrf.mxu2 }
 0x1d0   : > { %v1258_v18 = vadd.f32 %v497_v16, %v474_v12  ;;  %v517_v58 = vpop.f32.mrf.mxu0  ;;  %v614_v12 = vld [vmem:[#allocation5 + $0x1a1] sm:$0x1] }
 0x1d1   : > { %v518_v59 = vadd.f32 %v517_v58, %v475_v57  ;;  %v440_v57 = vld [vmem:[#allocation7 + $0x88] sm:$0xff]  ;;  %v437_v58 = vld [vmem:[#allocation7 + $0x70] sm:$0xff] }
 0x1d2   : > { %587 = vrot.lane.b32.xlu1 %v1258_v18, %s1144_s29 }
 0x244   : > { %v588_v52 = vpop.permute.xlu1 %587 }
 0x24f   : > { %v397_v14 = vpop.f32.mrf.mxu3 }
 0x250   : > { %v418_v17 = vadd.f32 %v417_v13, %v397_v14 }
 0x252   : > { %v421_v19 = vadd.f32 %v420_v15, %v418_v17 }
 0x254   : > { %v422_v21 = vmax.f32 %v421_v19, 0.0 }
 0x256   : > { %966 = vmatmul.msk.f32.vlgmr.msrb.gmra.mxu1 %vm270_vm0, %v422_v21 }
 0x2d3   : > { %v563_v32 = vpop.f32.mrf.mxu1 }
 0x2d4   : > { %v564_v33 = vadd.f32 %v563_v32, %v542_v31 }
 0x2d6   : > { %v566_v35 = vadd.f32 %v564_v33, %v1258_v18 }
 0x2d8   : > { %v967_v38 = vmul.f32 -1.442695, %v566_v35 }
 0x2da   : > { %1019 = vpow2.f32 %v967_v38  ;;  %v689_v38 = vld [vmem:[#allocation5 + $0x178] sm:$0xff] }
 0x2db   : > { %708 = vmatpush.msra.mxu1 %v689_v38 }
 0x2dd   : > { %709 = vmatpush.msra.mxu1 %v688_v40 }
 0x2df   : > { %710 = vmatpush.msra.mxu1 %v687_v42 }
 0x2e0   : > { %v1020_v43 = vpop.eup %1019 }
 0x2e1   : > { %v570_v44 = vadd.f32 1.0, %v1020_v43  ;;  %v464_v43 = vld [vmem:[#allocation7 + $0x148] sm:$0xff] }
 0x2e2   : > { %522 = vmatpush.msrb.mxu3 %v464_v43 }
 0x2e3   : > { %1021 = vrcp.f32 %v570_v44  ;;  %v582_v48 = vand.u32 2147483648, %v570_v44  ;;  %v580_v50 = vand.u32 2147483647, %v570_v44  ;;  %vm576_vm8 = vweird.f32 %v570_v44 }
 0x2e5   : > { %v583_v53 = vor.u32 1.1754944e-38, %v582_v48  ;;  %vm581_vm10 = vcmp.eq.f32.partialorder %v580_v50, 8.507059e+37 }
 0x2e9   : > { %v1022_v45 = vpop.eup %1021 }
 0x2ea   : > { %v572_v46 = vmul.f32 %v1022_v45, %v570_v44  ;;  %vm577_vm7 = vweird.f32 %v1022_v45  ;;  %v686_v44 = vld [vmem:[#allocation5 + $0x160] sm:$0xff] }
 0x2eb   : > { %vm578_vm9 = vmor %vm576_vm8, %vm577_vm7  ;;  %711 = vmatpush.msra.mxu1 %v686_v44 }
 0x2ec   : > { %v573_v47 = vsub.f32 1.0, %v572_v46 }
 0x2ee   : > { %v574_v49 = vmul.f32 %v1022_v45, %v573_v47 }
 0x2f0   : > { %v575_v51 = vadd.f32 %v1022_v45, %v574_v49 }
 0x2f2   : > { %v579_v54 = vsel %vm578_vm9, %v1022_v45, %v575_v51  ;;  %v461_v45 = vld [vmem:[#allocation7 + $0x130] sm:$0xff]  ;;  %v458_v51 = vld [vmem:[#allocation7 + $0x118] sm:$0xff] }
 0x2f3   : > { %v584_v55 = vsel %vm581_vm10, %v583_v53, %v579_v54  ;;  %523 = vmatpush.msrb.mxu3 %v461_v45  ;;  %v452_v53 = vld [vmem:[#allocation7 + $0xe8] sm:$0xff]  ;;  %v449_v54 = vld [vmem:[#allocation7 + $0xd0] sm:$0xff]  ;;  %vm842_vm10 = vcmask 785408  }
 0x2f4   : > { %v590_v56 = vmul.f32 %v588_v52, %v584_v55  ;;  %v597_v5 = vsub.f32 1.0, %v584_v55  ;;  %v455_v52 = vld [vmem:[#allocation7 + $0x100] sm:$0xff] }
 0x2f5   : > { %524 = vmatpush.msrb.mxu3 %v458_v51 }
 0x2f6   : > { %592 = vrot.lane.b32.xlu1 %v590_v56, %s1144_s29  ;;  %v443_v56 = vld [vmem:[#allocation7 + $0xa0] sm:$0xff] }
 0x2f7   : > { %525 = vmatpush.msrb.mxu3 %v455_v52 }
 0x2f9   : > { %526 = vmatpush.msrb.mxu3 %v452_v53 }
 0x2fb   : > { %527 = vmatpush.msrb.mxu3 %v449_v54 }
 0x2fe   : > { %642 = vrot.lane.b32.xlu1 %v1258_v18, %s1145_s30 }
 0x306   : > { %668 = vrot.lane.b32.xlu1 %v518_v59, %s1146_s7 }
 0x368   : > { %v593_v60 = vpop.permute.xlu1 %592 }
 0x369   : > { %v595_v61 = vadd.f32 %v593_v60, %v564_v33  ;;  %v431_v60 = vld [vmem:[#allocation7 + $0x40] sm:$0xff] }
 0x36b   : > { %1023 = vtanh.f32 %v595_v61  ;;  %v428_v61 = vld [vmem:[#allocation7 + $0x28] sm:$0xff] }
 0x370   : > { %v643_v15 = vpop.permute.xlu1 %642 }
 0x371   : > { %v1024_v62 = vpop.eup %1023 }
 0x372   : > { %599 = vrot.lane.b32.xlu2 %v1024_v62, %s1146_s7  ;;  %v425_v62 = vld [vmem:[#allocation7 + $0x10] sm:$0xff] }
 0x378   : > { %v669_v33 = vpop.permute.xlu1 %668 }
 0x37a   : > { %605 = vrot.lane.b32.xlu2 %v1271_v63, %s1145_s30 }
 0x382   : > { %644 = vrot.lane.b32.xlu2 %v518_v59, %s1145_s30 }
 0x3cc   : > { %v600_v4 = vpop.permute.xlu2 %599 }
 0x3cd   : > { %v602_v7 = vmul.f32 %v600_v4, %v597_v5 }
 0x3d4   : > { %v606_v6 = vpop.permute.xlu2 %605 }
 0x3d5   : > { %v608_v8 = vmul.f32 %v606_v6, %v584_v55  ;;  %v446_v55 = vld [vmem:[#allocation7 + $0xb8] sm:$0xff] }
 0x3d6   : > { %528 = vmatpush.msrb.mxu3 %v446_v55 }
 0x3d7   : > { %v609_v9 = vadd.f32 %v608_v8, %v602_v7 }
 0x3d8   : > { %529 = vmatpush.msrb.mxu3 %v443_v56 }
 0x3d9   : > { %616 = vrot.lane.b32.xlu0 %v609_v9, %s1146_s7 }
 0x3da   : > { %530 = vmatpush.msrb.mxu3 %v440_v57 }
 0x3dc   : > { %v645_v13 = vpop.permute.xlu2 %644  ;;  %531 = vmatpush.msrb.mxu3 %v437_v58 }
 0x3dd   : > { %v646_v17 = vsel %vm618_vm11, %v643_v15, %v645_v13 }
 0x3e1   : > { %716 = vrot.lane.b32.xlu0 %v518_v59, %s1144_s29  ;;  %v434_v59 = vld [vmem:[#allocation7 + $0x58] sm:$0xff] }
 0x3e2   : > { %532 = vmatpush.msrb.mxu3 %v434_v59 }
 0x3e4   : > { %533 = vmatpush.msrb.mxu3 %v431_v60 }
 0x3e6   : > { %534 = vmatpush.msrb.mxu3 %v428_v61  ;;  %v849_v61 = vld [vmem:[#allocation5 + $0x1c0] sm:$0xff] }
 0x3e7   : > { %867 = vmatpush.msrb.mxu2 %v849_v61 }
 0x3e8   : > { %535 = vmatpush.msrb.mxu3 %v425_v62  ;;  %v848_v62 = vld [vmem:[#allocation5 + $0x1b8] sm:$0xff] }
 0x3e9   : > { %752 = vrot.lane.b32.xlu0 %v1271_v63, %s1146_s7  ;;  %536 = vmatmul.f32.vlgmr.msrb.gmra.mxu3 %v1239_v20 }
 0x3ea   : > { %868 = vmatpush.msrb.mxu2 %v848_v62 }
 0x44b   : > { %v1280_v10 = vpop.permute.xlu0 %616 }
 0x44c   : > { %968 = vmatmul.msk.f32.vlgmr.msra.gmra.mxu2 %vm618_vm11, %v1280_v10 }
 0x453   : > { %v717_v7 = vpop.permute.xlu0 %716 }
 0x46c   : > { %v537_v3 = vpop.f32.mrf.mxu3 }
 0x46d   : > { %v538_v4 = vadd.f32 %v537_v3, %v476_v1  ;;  %v846_v1 = vld [vmem:[#allocation5 + $0x1a8] sm:$0xff] }
 0x46f   : > { %811 = vrot.lane.b32.xlu0 %v538_v4, %s1145_s30 }
 0x477   : > { %827 = vrot.lane.b32.xlu0 %v1271_v63, %s1144_s29 }
 0x4cf   : > { %v638_v14 = vpop.f32.mrf.mxu2 }
 0x4d0   : > { %v639_v16 = vadd.f32 %v638_v14, %v614_v12 }
 0x4d2   : > { %v648_v18 = vadd.f32 %v646_v17, %v639_v16 }
 0x4d4   : > { %v969_v19 = vmul.f32 -1.442695, %v648_v18 }
 0x4d6   : > { %1025 = vpow2.f32 %v969_v19 }
 0x4dc   : > { %v1026_v21 = vpop.eup %1025 }
 0x4dd   : > { %v652_v22 = vadd.f32 1.0, %v1026_v21 }
 0x4df   : > { %1027 = vrcp.f32 %v652_v22  ;;  %v664_v26 = vand.u32 2147483648, %v652_v22  ;;  %v662_v28 = vand.u32 2147483647, %v652_v22  ;;  %vm658_vm13 = vweird.f32 %v652_v22 }
 0x4e1   : > { %v665_v30 = vor.u32 1.1754944e-38, %v664_v26  ;;  %vm663_vm15 = vcmp.eq.f32.partialorder %v662_v28, 8.507059e+37  ;;  %v760_v26 = vld [vmem:[#allocation5 + $0x198] sm:$0xff]  ;;  %v758_v28 = vld [vmem:[#allocation5 + $0x188] sm:$0xff] }
 0x4e2   : > { %779 = vmatpush.msrb.mxu0 %v760_v26 }
 0x4e5   : > { %v1028_v23 = vpop.eup %1027 }
 0x4e6   : > { %v654_v24 = vmul.f32 %v1028_v23, %v652_v22  ;;  %vm659_vm12 = vweird.f32 %v1028_v23 }
 0x4e7   : > { %vm660_vm14 = vmor %vm658_vm13, %vm659_vm12 }
 0x4e8   : > { %v655_v25 = vsub.f32 1.0, %v654_v24 }
 0x4ea   : > { %v656_v27 = vmul.f32 %v1028_v23, %v655_v25 }
 0x4ec   : > { %v657_v29 = vadd.f32 %v1028_v23, %v656_v27  ;;  %v759_v27 = vld [vmem:[#allocation5 + $0x190] sm:$0xff] }
 0x4ed   : > { %780 = vmatpush.msrb.mxu0 %v759_v27 }
 0x4ee   : > { %v661_v31 = vsel %vm660_vm14, %v1028_v23, %v657_v29  ;;  %v757_v29 = vld [vmem:[#allocation5 + $0x180] sm:$0xff] }
 0x4ef   : > { %v666_v32 = vsel %vm663_vm15, %v665_v30, %v661_v31  ;;  %781 = vmatpush.msrb.mxu0 %v758_v28  ;;  %v753_v30 = vpop.permute.xlu0 %752 }
 0x4f0   : > { %v671_v34 = vmul.f32 %v669_v33, %v666_v32  ;;  %v678_v46 = vsub.f32 1.0, %v666_v32  ;;  %v684_v48 = vmul.f32 %v666_v32, %v1239_v20 }
 0x4f1   : > { %782 = vmatpush.msrb.mxu0 %v757_v29 }
 0x4f2   : > { %673 = vrot.lane.b32.xlu2 %v671_v34, %s1144_s29 }
 0x4f7   : > { %v812_v55 = vpop.permute.xlu0 %811 }
 0x54c   : > { %v674_v35 = vpop.permute.xlu2 %673 }
 0x54d   : > { %v676_v36 = vadd.f32 %v674_v35, %v639_v16 }
 0x54f   : > { %1029 = vtanh.f32 %v676_v36 }
 0x555   : > { %v1030_v37 = vpop.eup %1029 }
 0x556   : > { %680 = vrot.lane.b32.xlu1 %v1030_v37, %s1146_s7  ;;  %v761_v37 = vld [vmem:[#allocation5 + $0x1a3] sm:$0x1] }
 0x5c8   : > { %v681_v47 = vpop.permute.xlu1 %680 }
 0x5c9   : > { %v683_v49 = vmul.f32 %v681_v47, %v678_v46 }
 0x5cb   : > { %v1288_v50 = vadd.f32 %v684_v48, %v683_v49 }
 0x5cd   : > { %692 = vrot.lane.b32.xlu2 %v1288_v50, %s1146_s7 }
 0x627   : > { %v693_v0 = vpop.permute.xlu2 %692 }
 0x628   : > { %970 = vmatmul.msk.f32.vlgmr.msra.gmra.mxu1 %vm618_vm11, %v693_v0  ;;  %v847_v0 = vld [vmem:[#allocation5 + $0x1b0] sm:$0xff] }
 0x629   : > { %869 = vmatpush.msrb.mxu2 %v847_v0 }
 0x62b   : > { %870 = vmatpush.msrb.mxu2 %v846_v1 }
 0x6a5   : > { %v713_v5 = vpop.f32.mrf.mxu1 }
 0x6a6   : > { %v714_v6 = vadd.f32 %v713_v5, %v690_v2  ;;  %v828_v2 = vpop.permute.xlu0 %827 }
 0x6a8   : > { %v719_v8 = vadd.f32 %v717_v7, %v714_v6 }
 0x6aa   : > { %v971_v9 = vmul.f32 -1.442695, %v719_v8 }
 0x6ac   : > { %1031 = vpow2.f32 %v971_v9 }
 0x6b2   : > { %v1032_v20 = vpop.eup %1031 }
 0x6b3   : > { %v723_v12 = vadd.f32 1.0, %v1032_v20  ;;  %v840_v20 = vsel %vm618_vm11, %v1280_v10, %v1288_v50 }
 0x6b5   : > { %1033 = vrcp.f32 %v723_v12  ;;  %v735_v15 = vand.u32 2147483648, %v723_v12  ;;  %v733_v17 = vand.u32 2147483647, %v723_v12  ;;  %vm729_vm2 = vweird.f32 %v723_v12 }
 0x6b7   : > { %v736_v19 = vor.u32 1.1754944e-38, %v735_v15  ;;  %vm734_vm4 = vcmp.eq.f32.partialorder %v733_v17, 8.507059e+37 }
 0x6bb   : > { %v1034_v13 = vpop.eup %1033 }
 0x6bc   : > { %v725_v14 = vmul.f32 %v1034_v13, %v723_v12  ;;  %vm730_vm0 = vweird.f32 %v1034_v13 }
 0x6bd   : > { %vm731_vm3 = vmor %vm729_vm2, %vm730_vm0 }
 0x6be   : > { %v726_v11 = vsub.f32 1.0, %v725_v14 }
 0x6c0   : > { %v727_v16 = vmul.f32 %v1034_v13, %v726_v11  ;;  %v850_v11 = vld [vmem:[#allocation5 + $0x1c8] sm:$0x1] }
 0x6c2   : > { %v728_v18 = vadd.f32 %v1034_v13, %v727_v16 }
 0x6c4   : > { %v732_v21 = vsel %vm731_vm3, %v1034_v13, %v728_v18 }
 0x6c5   : > { %v737_v22 = vsel %vm734_vm4, %v736_v19, %v732_v21 }
 0x6c6   : > { %v739_v23 = vmul.f32 %v737_v22, %v538_v4  ;;  %v746_v31 = vsub.f32 1.0, %v737_v22  ;;  %v755_v33 = vmul.f32 %v753_v30, %v737_v22 }
 0x6c8   : > { %741 = vrot.lane.b32.xlu1 %v739_v23, %s1144_s29 }
 0x73a   : > { %v742_v63 = vpop.permute.xlu1 %741 }
 0x73b   : > { %v744_v24 = vadd.f32 %v742_v63, %v714_v6 }
 0x73d   : > { %1035 = vtanh.f32 %v744_v24 }
 0x743   : > { %v1036_v25 = vpop.eup %1035 }
 0x744   : > { %748 = vrot.lane.b32.xlu2 %v1036_v25, %s1146_s7 }
 0x74c   : > { %788 = vrot.lane.b32.xlu2 %v538_v4, %s1146_s7 }
 0x79e   : > { %v749_v32 = vpop.permute.xlu2 %748 }
 0x79f   : > { %v751_v34 = vmul.f32 %v749_v32, %v746_v31 }
 0x7a1   : > { %v756_v35 = vadd.f32 %v755_v33, %v751_v34 }
 0x7a3   : > { %763 = vrot.lane.b32.xlu1 %v756_v35, %s1146_s7 }
 0x7a6   : > { %v789_v40 = vpop.permute.xlu2 %788 }
 0x815   : > { %v764_v36 = vpop.permute.xlu1 %763 }
 0x816   : > { %972 = vmatmul.msk.f32.vlgmr.msrb.gmra.mxu0 %vm618_vm11, %v764_v36 }
 0x893   : > { %v784_v38 = vpop.f32.mrf.mxu0 }
 0x894   : > { %v785_v39 = vadd.f32 %v784_v38, %v761_v37 }
 0x896   : > { %v791_v41 = vadd.f32 %v789_v40, %v785_v39 }
 0x898   : > { %v973_v42 = vmul.f32 -1.442695, %v791_v41 }
 0x89a   : > { %1037 = vpow2.f32 %v973_v42 }
 0x8a0   : > { %v1038_v43 = vpop.eup %1037 }
 0x8a1   : > { %v795_v44 = vadd.f32 1.0, %v1038_v43 }
 0x8a3   : > { %1039 = vrcp.f32 %v795_v44  ;;  %v807_v48 = vand.u32 2147483648, %v795_v44  ;;  %v805_v51 = vand.u32 2147483647, %v795_v44  ;;  %vm801_vm7 = vweird.f32 %v795_v44 }
 0x8a5   : > { %v808_v53 = vor.u32 1.1754944e-38, %v807_v48  ;;  %vm806_vm9 = vcmp.eq.f32.partialorder %v805_v51, 8.507059e+37 }
 0x8a9   : > { %v1040_v45 = vpop.eup %1039 }
 0x8aa   : > { %v797_v46 = vmul.f32 %v1040_v45, %v795_v44  ;;  %vm802_vm5 = vweird.f32 %v1040_v45 }
 0x8ab   : > { %vm803_vm8 = vmor %vm801_vm7, %vm802_vm5 }
 0x8ac   : > { %v798_v47 = vsub.f32 1.0, %v797_v46 }
 0x8ae   : > { %v799_v49 = vmul.f32 %v1040_v45, %v798_v47 }
 0x8b0   : > { %v800_v52 = vadd.f32 %v1040_v45, %v799_v49 }
 0x8b2   : > { %v804_v54 = vsel %vm803_vm8, %v1040_v45, %v800_v52 }
 0x8b3   : > { %v809_v56 = vsel %vm806_vm9, %v808_v53, %v804_v54 }
 0x8b4   : > { %v814_v57 = vmul.f32 %v812_v55, %v809_v56  ;;  %v821_v3 = vsub.f32 1.0, %v809_v56  ;;  %v830_v5 = vmul.f32 %v828_v2, %v809_v56 }
 0x8b6   : > { %816 = vrot.lane.b32.xlu1 %v814_v57, %s1144_s29 }
 0x928   : > { %v817_v58 = vpop.permute.xlu1 %816 }
 0x929   : > { %v819_v59 = vadd.f32 %v817_v58, %v785_v39 }
 0x92b   : > { %1041 = vtanh.f32 %v819_v59 }
 0x931   : > { %v1042_v60 = vpop.eup %1041 }
 0x932   : > { %823 = vrot.lane.b32.xlu2 %v1042_v60, %s1146_s7 }
 0x98c   : > { %v824_v4 = vpop.permute.xlu2 %823 }
 0x98d   : > { %v826_v6 = vmul.f32 %v824_v4, %v821_v3 }
 0x98f   : > { %v831_v7 = vadd.f32 %v830_v5, %v826_v6 }
 0x991   : > { %851 = vrot.lane.b32.xlu1 %v831_v7, %s1146_s7 }
 0x999   : > { %833 = vrot.lane.b32.xlu1 %v756_v35, %s1145_s30 }
 0x9a1   : > { %837 = vrot.lane.b32.xlu1 %v831_v7, %s1144_s29 }
 0xa03   : > { %v852_v8 = vpop.permute.xlu1 %851 }
 0xa04   : > { %974 = vmatmul.msk.f32.vlgmr.msrb.gmra.mxu2 %vm618_vm11, %v852_v8 }
 0xa0b   : > { %v834_v9 = vpop.permute.xlu1 %833 }
 0xa0c   : > { %v841_v12 = vsel %vm376_vm6, %v840_v20, %v834_v9 }
 0xa13   : > { %v838_v13 = vpop.permute.xlu1 %837 }
 0xa14   : > { %v843_v14 = vsel %vm842_vm10, %v841_v12, %v838_v13 }
 0xa15   : > { %844 = vst [vmem:[#allocation2] sm:$0x1] %v843_v14 }
 0xa16   : > { %845 = vst [vmem:[%s1332_s6] sm:$0x1] %v843_v14 }
 0xa87   : > { %v872_v15 = vpop.f32.mrf.mxu2 }
 0xa88   : > { %v873_v16 = vadd.f32 %v872_v15, %v850_v11 }
 0xa8a   : > { %v875_v17 = vsel %vm316_vm1, %v873_v16, -inf }
 0xa8b   : > { %876 = vmax.xlane.f32.xlu2 %v875_v17 }
 0xafe   : > { %v877_v18 = vpop.xlane.xlu2 %876 }
 0xaff   : > { %v878_v19 = vsub.f32 %v873_v16, %v877_v18 }
 0xb01   : > { %v879_v21 = vmul.f32 1.442695, %v878_v19 }
 0xb03   : > { %1043 = vpow2.f32 %v879_v21 }
 0xb09   : > { %v1044_v10 = vpop.eup %1043 }
 0xb0a   : > { %v881_v50 = vsel %vm316_vm1, %v1044_v10, 0.0 }
 0xb0b   : > { %882 = vadd.xlane.f32.xlu0 %v881_v50 }
 0xb7e   : > { %v883_v22 = vpop.xlane.xlu0 %882 }
 0xb7f   : > { %1045 = vlog2.f32 %v883_v22 }
 0xb85   : > { %v1046_v23 = vpop.eup %1045 }
 0xb86   : > { %v885_v63 = vmul.f32 0.6931472, %v1046_v23 }
 0xb88   : > { %v886_v24 = vadd.f32 %v885_v63, %v877_v18 }
 0xb8a   : > { %v887_v25 = vsub.f32 %v873_v16, %v886_v24 }
 0xb8c   : > { %888 = vst [vmem:[%s241_s20] sm:$0x1] %v887_v25 }
 0xb8d PF: > { %s27_s25 = sadd.s32 1, %s1135_s25  }
 0xb8e   : > { %p24_p8 = scmp.ge.s32.totalorder %s27_s25, 8  }
 0xb90   :  { %26 = sbr.rel (!%p24_p8) target bundleno = 8 (0x8), region = 86 }
 0xb95   :  { %912 = vsyncpa [#allocation6], 1 }
 0xb96   :  { %914 = vsyncpa [#allocation6 + $0x1], 1 }
 0xb97   :  { %915 = vsyncpa [#allocation8], 1 }

</bundles_post_ra>
